<compile_context>
chip_gen: v7x
topology: tpu7x:2x2x1
jax: 0.10.0
libtpu: 0.0.40
codegen_flags: <defaults>
</compile_context>

<pallas_src>
import functools

import jax
import jax.numpy as jnp
from jax.experimental import pallas as pl
from jax.experimental.pallas import tpu as pltpu

INPUT_NODES = 50    # window_size
HIDDEN1 = 70
HIDDEN2 = 70
OUTPUT_NODES = 5

LANE = 128          # padded hidden width
OUT_PAD = 8         # padded output width (last dim == full array dim -> legal block)
DEFAULT_TB = 2048   # batch tile (rows); multiple of 16 (bf16 sublane packing)


def _round_up(n, m):
    return ((n + m - 1) // m) * m


def _sigmoid_f32(x):
    # Single EUP transcendental per element (tanh); mul/add go to the VALU.
    return 0.5 * jnp.tanh(0.5 * x) + 0.5


def mlp_kernel(x_ref, w1_ref, b1_ref, w2_ref, b2_ref, w3_ref, b3_ref, o_ref):
    # x_ref: (TB, 50) f32;  w1: (50, 128) bf16;  w2: (128, 128) bf16;
    # w3: (128, 8) bf16;  b1/b2: (1, 128) f32;  b3: (1, 8) f32;  o: (TB, 8) f32
    x = x_ref[...].astype(jnp.bfloat16)
    h1 = _sigmoid_f32(
        jnp.dot(x, w1_ref[...], preferred_element_type=jnp.float32) + b1_ref[...]
    ).astype(jnp.bfloat16)
    h2 = _sigmoid_f32(
        jnp.dot(h1, w2_ref[...], preferred_element_type=jnp.float32) + b2_ref[...]
    ).astype(jnp.bfloat16)
    out = _sigmoid_f32(
        jnp.dot(h2, w3_ref[...], preferred_element_type=jnp.float32) + b3_ref[...]
    )
    o_ref[...] = out.astype(o_ref.dtype)


def prepare_params(params):
    """Pad + cast the raw (in, out) params ONCE into kernel-ready buffers."""
    w1, b1, w2, b2, w3, b3 = params

    def pad2(a, rows, cols):
        # Zero padding is load-bearing: padded weight ROWS must be exactly 0 so
        # that sigmoid(0)=0.5 ghost hidden lanes contribute nothing downstream.
        return jnp.pad(a, ((0, rows - a.shape[0]), (0, cols - a.shape[1])))

    w1_p = pad2(w1, INPUT_NODES, LANE).astype(jnp.bfloat16)   # (50, 128)
    w2_p = pad2(w2, LANE, LANE).astype(jnp.bfloat16)          # (128, 128)
    w3_p = pad2(w3, LANE, OUT_PAD).astype(jnp.bfloat16)       # (128, 8)
    b1_p = pad2(b1, 1, LANE)                                  # f32 bias adds
    b2_p = pad2(b2, 1, LANE)
    b3_p = pad2(b3, 1, OUT_PAD)
    return (w1_p, b1_p, w2_p, b2_p, w3_p, b3_p)


def _pick_tb(batch, tb_max):
    # >= 2 grid steps when the batch allows, so ("parallel",) actually feeds
    # both v7x TensorCores; multiple of 16 for bf16-native sublane packing.
    half = _round_up(max(1, pl.cdiv(batch, 2)), 16)
    return max(16, min(tb_max, half))


@functools.partial(jax.jit, static_argnames=("tb_max",))
def neural_network_forward(x, prepared_params, *, tb_max=DEFAULT_TB):
    """x: [B, INPUT_NODES] float32. Returns [B, OUTPUT_NODES] float32."""
    w1_p, b1_p, w2_p, b2_p, w3_p, b3_p = prepared_params
    B = x.shape[0]

    tb = _pick_tb(B, tb_max)
    b_pad = _round_up(B, tb)

    # Only the batch dim is padded; feature dim (50) stays as-is and the
    # bf16 cast happens inside the kernel (no extra HBM pass over x).
    x_p = jnp.pad(x, ((0, b_pad - B), (0, 0)))

    grid = (b_pad // tb,)
    w_hidden_spec = pl.BlockSpec((LANE, LANE), lambda i: (0, 0))     # resident
    w1_spec = pl.BlockSpec((INPUT_NODES, LANE), lambda i: (0, 0))    # resident
    w3_spec = pl.BlockSpec((LANE, OUT_PAD), lambda i: (0, 0))        # resident
    b_hidden_spec = pl.BlockSpec((1, LANE), lambda i: (0, 0))
    b3_spec = pl.BlockSpec((1, OUT_PAD), lambda i: (0, 0))

    out_padded = pl.pallas_call(
        mlp_kernel,
        out_shape=jax.ShapeDtypeStruct((b_pad, OUT_PAD), jnp.float32),
        grid=grid,
        in_specs=[
            pl.BlockSpec((tb, INPUT_NODES), lambda i: (i, 0)),   # x tile (f32)
            w1_spec, b_hidden_spec,
            w_hidden_spec, b_hidden_spec,
            w3_spec, b3_spec,
        ],
        out_specs=pl.BlockSpec((tb, OUT_PAD), lambda i: (i, 0)),     # narrow output
        compiler_params=pltpu.CompilerParams(
            dimension_semantics=("parallel",)),                      # 2 TCs on v7x
    )(x_p, w1_p, b1_p, w2_p, b2_p, w3_p, b3_p)

    return out_padded[:B, :OUTPUT_NODES]


def init_params(key):
    """Deterministic init mimicking nn.Linear's U(-1/sqrt(fan_in), 1/sqrt(fan_in))."""
    def linear(k, fan_in, fan_out):
        kw, kb = jax.random.split(k)
        bound = 1.0 / jnp.sqrt(float(fan_in))
        # stored as (in, out) so the kernel does x @ W
        w = jax.random.uniform(kw, (fan_in, fan_out), jnp.float32, -bound, bound)
        b = jax.random.uniform(kb, (1, fan_out), jnp.float32, -bound, bound)
        return w, b

    k1, k2, k3 = jax.random.split(key, 3)
    w1, b1 = linear(k1, INPUT_NODES, HIDDEN1)
    w2, b2 = linear(k2, HIDDEN1, HIDDEN2)
    w3, b3 = linear(k3, HIDDEN2, OUTPUT_NODES)
    return (w1, b1, w2, b2, w3, b3)


def reference_forward(x, params):
    w1, b1, w2, b2, w3, b3 = params
    h1 = jax.nn.sigmoid(x @ w1 + b1)
    h2 = jax.nn.sigmoid(h1 @ w2 + b2)
    return jax.nn.sigmoid(h2 @ w3 + b3)


if __name__ == "__main__":
    key = jax.random.PRNGKey(0)
    kx, kp = jax.random.split(key)
    B = 8
    x = jax.random.normal(kx, (B, INPUT_NODES), jnp.float32)
    params = init_params(kp)
    prepared = prepare_params(params)   # pad/cast once, reused across calls

    out = neural_network_forward(x, prepared)
    out = jax.block_until_ready(out)

    ref = reference_forward(x, params)
    assert out.shape == (B, OUTPUT_NODES)
    # bf16 MXU inputs bound the error vs the f32 reference (sigmoid is exact tanh form).
    assert jnp.max(jnp.abs(out - ref)) < 2e-2
    print("KERNEL_OK")
</pallas_src>

<mosaic_0001>
module attributes {stable_mosaic.version = 11 : i64} {
  func.func @mlp_kernel(%arg0: i32, %arg1: memref<16x50xf32, #tpu.memory_space<vmem>>, %arg2: memref<50x128xbf16, #tpu.memory_space<vmem>>, %arg3: memref<1x128xf32, #tpu.memory_space<vmem>>, %arg4: memref<128x128xbf16, #tpu.memory_space<vmem>>, %arg5: memref<1x128xf32, #tpu.memory_space<vmem>>, %arg6: memref<128x8xbf16, #tpu.memory_space<vmem>>, %arg7: memref<1x8xf32, #tpu.memory_space<vmem>>, %arg8: memref<16x8xf32, #tpu.memory_space<vmem>>) attributes {dimension_semantics = [#tpu.dimension_semantics<parallel>], iteration_bounds = array<i64: 1>, scalar_prefetch = 0 : i64, scratch_operands = 0 : i64, tpu.core_type = #tpu.core_type<tc>, window_params = [{transform_indices = @transform_0, window_bounds = array<i64: 16, 50>}, {pipeline_mode = #tpu.pipeline_mode<synchronous>, transform_indices = @transform_1, window_bounds = array<i64: 50, 128>}, {pipeline_mode = #tpu.pipeline_mode<synchronous>, transform_indices = @transform_2, window_bounds = array<i64: 1, 128>}, {pipeline_mode = #tpu.pipeline_mode<synchronous>, transform_indices = @transform_3, window_bounds = array<i64: 128, 128>}, {pipeline_mode = #tpu.pipeline_mode<synchronous>, transform_indices = @transform_4, window_bounds = array<i64: 1, 128>}, {pipeline_mode = #tpu.pipeline_mode<synchronous>, transform_indices = @transform_5, window_bounds = array<i64: 128, 8>}, {pipeline_mode = #tpu.pipeline_mode<synchronous>, transform_indices = @transform_6, window_bounds = array<i64: 1, 8>}, {transform_indices = @transform_7, window_bounds = array<i64: 16, 8>}]} {
    %c0 = arith.constant 0 : index
    %c0_0 = arith.constant 0 : index
    %0 = vector.load %arg1[%c0, %c0_0] : memref<16x50xf32, #tpu.memory_space<vmem>>, vector<16x50xf32>
    %1 = arith.truncf %0 : vector<16x50xf32> to vector<16x50xbf16>
    %c0_1 = arith.constant 0 : index
    %c0_2 = arith.constant 0 : index
    %2 = vector.load %arg2[%c0_1, %c0_2] : memref<50x128xbf16, #tpu.memory_space<vmem>>, vector<50x128xbf16>
    %cst = arith.constant dense<0.000000e+00> : vector<16x128xf32>
    %3 = tpu.matmul %1, %2, %cst {dimension_numbers = #tpu.dot_dimension_numbers<[1], [0], [0], [1], [0, 0, 1, 1], [], []>} : vector<16x50xbf16>, vector<50x128xbf16>, vector<16x128xf32> -> vector<16x128xf32>
    %c0_3 = arith.constant 0 : index
    %c0_4 = arith.constant 0 : index
    %4 = vector.load %arg3[%c0_3, %c0_4] : memref<1x128xf32, #tpu.memory_space<vmem>>, vector<1x128xf32>
    %5 = vector.broadcast %4 : vector<1x128xf32> to vector<16x128xf32>
    %6 = arith.addf %3, %5 : vector<16x128xf32>
    %cst_5 = arith.constant 5.000000e-01 : f32
    %7 = vector.broadcast %cst_5 : f32 to vector<16x128xf32>
    %8 = arith.mulf %7, %6 : vector<16x128xf32>
    %9 = math.tanh %8 : vector<16x128xf32>
    %cst_6 = arith.constant 5.000000e-01 : f32
    %10 = vector.broadcast %cst_6 : f32 to vector<16x128xf32>
    %11 = arith.mulf %10, %9 : vector<16x128xf32>
    %cst_7 = arith.constant 5.000000e-01 : f32
    %12 = vector.broadcast %cst_7 : f32 to vector<16x128xf32>
    %13 = arith.addf %11, %12 : vector<16x128xf32>
    %14 = arith.truncf %13 : vector<16x128xf32> to vector<16x128xbf16>
    %c0_8 = arith.constant 0 : index
    %c0_9 = arith.constant 0 : index
    %15 = vector.load %arg4[%c0_8, %c0_9] : memref<128x128xbf16, #tpu.memory_space<vmem>>, vector<128x128xbf16>
    %cst_10 = arith.constant dense<0.000000e+00> : vector<16x128xf32>
    %16 = tpu.matmul %14, %15, %cst_10 {dimension_numbers = #tpu.dot_dimension_numbers<[1], [0], [0], [1], [0, 0, 1, 1], [], []>} : vector<16x128xbf16>, vector<128x128xbf16>, vector<16x128xf32> -> vector<16x128xf32>
    %c0_11 = arith.constant 0 : index
    %c0_12 = arith.constant 0 : index
    %17 = vector.load %arg5[%c0_11, %c0_12] : memref<1x128xf32, #tpu.memory_space<vmem>>, vector<1x128xf32>
    %18 = vector.broadcast %17 : vector<1x128xf32> to vector<16x128xf32>
    %19 = arith.addf %16, %18 : vector<16x128xf32>
    %cst_13 = arith.constant 5.000000e-01 : f32
    %20 = vector.broadcast %cst_13 : f32 to vector<16x128xf32>
    %21 = arith.mulf %20, %19 : vector<16x128xf32>
    %22 = math.tanh %21 : vector<16x128xf32>
    %cst_14 = arith.constant 5.000000e-01 : f32
    %23 = vector.broadcast %cst_14 : f32 to vector<16x128xf32>
    %24 = arith.mulf %23, %22 : vector<16x128xf32>
    %cst_15 = arith.constant 5.000000e-01 : f32
    %25 = vector.broadcast %cst_15 : f32 to vector<16x128xf32>
    %26 = arith.addf %24, %25 : vector<16x128xf32>
    %27 = arith.truncf %26 : vector<16x128xf32> to vector<16x128xbf16>
    %c0_16 = arith.constant 0 : index
    %c0_17 = arith.constant 0 : index
    %28 = vector.load %arg6[%c0_16, %c0_17] : memref<128x8xbf16, #tpu.memory_space<vmem>>, vector<128x8xbf16>
    %cst_18 = arith.constant dense<0.000000e+00> : vector<16x8xf32>
    %29 = tpu.matmul %27, %28, %cst_18 {dimension_numbers = #tpu.dot_dimension_numbers<[1], [0], [0], [1], [0, 0, 1, 1], [], []>} : vector<16x128xbf16>, vector<128x8xbf16>, vector<16x8xf32> -> vector<16x8xf32>
    %c0_19 = arith.constant 0 : index
    %c0_20 = arith.constant 0 : index
    %30 = vector.load %arg7[%c0_19, %c0_20] : memref<1x8xf32, #tpu.memory_space<vmem>>, vector<1x8xf32>
    %31 = vector.broadcast %30 : vector<1x8xf32> to vector<16x8xf32>
    %32 = arith.addf %29, %31 : vector<16x8xf32>
    %cst_21 = arith.constant 5.000000e-01 : f32
    %33 = vector.broadcast %cst_21 : f32 to vector<16x8xf32>
    %34 = arith.mulf %33, %32 : vector<16x8xf32>
    %35 = math.tanh %34 : vector<16x8xf32>
    %cst_22 = arith.constant 5.000000e-01 : f32
    %36 = vector.broadcast %cst_22 : f32 to vector<16x8xf32>
    %37 = arith.mulf %36, %35 : vector<16x8xf32>
    %cst_23 = arith.constant 5.000000e-01 : f32
    %38 = vector.broadcast %cst_23 : f32 to vector<16x8xf32>
    %39 = arith.addf %37, %38 : vector<16x8xf32>
    %c0_24 = arith.constant 0 : index
    %c0_25 = arith.constant 0 : index
    %40 = vector.load %arg8[%c0_24, %c0_25] : memref<16x8xf32, #tpu.memory_space<vmem>>, vector<16x8xf32>
    tpu.vector_store %arg8[%c0_24, %c0_25], %39 {strides = array<i32>} : memref<16x8xf32, #tpu.memory_space<vmem>>, vector<16x8xf32>,
    return
  }
  func.func @transform_0(%arg0: i32) -> (i32, i32) {
    %c0_i32 = arith.constant 0 : i32
    %c0_i32_0 = arith.constant 0 : i32
    return %arg0, %c0_i32 : i32, i32
  }
  func.func @transform_1(%arg0: i32) -> (i32, i32) {
    %c0_i32 = arith.constant 0 : i32
    %c0_i32_0 = arith.constant 0 : i32
    %c0_i32_1 = arith.constant 0 : i32
    return %c0_i32, %c0_i32_0 : i32, i32
  }
  func.func @transform_2(%arg0: i32) -> (i32, i32) {
    %c0_i32 = arith.constant 0 : i32
    %c0_i32_0 = arith.constant 0 : i32
    %c0_i32_1 = arith.constant 0 : i32
    return %c0_i32, %c0_i32_0 : i32, i32
  }
  func.func @transform_3(%arg0: i32) -> (i32, i32) {
    %c0_i32 = arith.constant 0 : i32
    %c0_i32_0 = arith.constant 0 : i32
    %c0_i32_1 = arith.constant 0 : i32
    return %c0_i32, %c0_i32_0 : i32, i32
  }
  func.func @transform_4(%arg0: i32) -> (i32, i32) {
    %c0_i32 = arith.constant 0 : i32
    %c0_i32_0 = arith.constant 0 : i32
    %c0_i32_1 = arith.constant 0 : i32
    return %c0_i32, %c0_i32_0 : i32, i32
  }
  func.func @transform_5(%arg0: i32) -> (i32, i32) {
    %c0_i32 = arith.constant 0 : i32
    %c0_i32_0 = arith.constant 0 : i32
    %c0_i32_1 = arith.constant 0 : i32
    return %c0_i32, %c0_i32_0 : i32, i32
  }
  func.func @transform_6(%arg0: i32) -> (i32, i32) {
    %c0_i32 = arith.constant 0 : i32
    %c0_i32_0 = arith.constant 0 : i32
    %c0_i32_1 = arith.constant 0 : i32
    return %c0_i32, %c0_i32_0 : i32, i32
  }
  func.func @transform_7(%arg0: i32) -> (i32, i32) {
    %c0_i32 = arith.constant 0 : i32
    %c0_i32_0 = arith.constant 0 : i32
    return %arg0, %c0_i32 : i32, i32
  }
}

</mosaic_0001>

<bundles_post_ra>
// kernel: neural_network_forward.1
= control target key start
LH: loop header
LB: loop body
LE: loop exit
PB: predicated region body
PF: predicated region fallthrough
CT: control target
= control target key end

     0   :  { %v504_v0 = vmov 0.0   ;;  %vm505_vm0 = vmmov 0   ;;  %vm69_vm1 = vcmask 1040384   ;;  %vm65_vm2 = vcmask 408576   ;;  %s653_s1 = inlined_call_operand.vmem [shape: bf16[50,128], index: 1, kind: input, shape index: {}]   ;;  %s654_s3 = inlined_call_operand.vmem [shape: bf16[128,128], index: 3, kind: input, shape index: {}]   ;;  %s655_s0 = inlined_call_operand.vmem [shape: f32[16,50], index: 0, kind: input, shape index: {}]   ;;  %s656_s5 = inlined_call_operand.vmem [shape: bf16[128,8], index: 5, kind: input, shape index: {}]   ;;  %s657_s2 = inlined_call_operand.vmem [shape: f32[1,128], index: 2, kind: input, shape index: {}]   ;;  %s658_s4 = inlined_call_operand.vmem [shape: f32[1,128], index: 4, kind: input, shape index: {}]   ;;  %s659_s6 = inlined_call_operand.vmem [shape: f32[1,8], index: 6, kind: input, shape index: {}]   ;;  %s660_s7 = inlined_call_operand.vmem [shape: f32[16,8], index: 7, kind: output, shape index: {}]  }
   0x1   :  { %418 = vmatprep.subr.bf16.mxu0 %v504_v0  ;;  %v472_v1 = vld [vmem:[%s653_s1] sm:$0xff]   ;;  %426 = vmatprep.mubr.msk.bf16.mxu0 %vm505_vm0, %v504_v0  ;;  %v473_v2 = vld [vmem:[%s653_s1 + $0x8] sm:$0xff]   ;;  %v474_v3 = vld [vmem:[%s653_s1 + $0x10] sm:$0xff]   ;;  %vm364_vm3 = vcmask 64512  }
   0x2   :  { %430 = vmatprep.subr.bf16.mxu1 %v504_v0  ;;  %446 = vmatprep.mubr.msk.bf16.mxu1 %vm505_vm0, %v504_v0  ;;  %v476_v4 = vld [vmem:[%s654_s3] sm:$0xff]   ;;  %v475_v5 = vld [vmem:[%s653_s1 + $0x18] ss:$0 sps:$4 sm:$0x11]   ;;  %v477_v6 = vld [vmem:[%s654_s3 + $0x8] sm:$0xff]  }
   0x3   :  { %419 = vmatpush3.bf16.msra.mxu0 %v472_v1  ;;  %431 = vmatpush3.bf16.msra.mxu1 %v476_v4  ;;  %v27_v7 = vld [vmem:[%s655_s0] sm:$0xff]  ;;  %v28_v8 = vld [vmem:[%s655_s0 + $0x8] sm:$0xff]  ;;  %v71_v9 = vsel %vm69_vm1, %v475_v5, 0  ;;  %v478_v11 = vld [vmem:[%s654_s3 + $0x10] sm:$0xff]  }
   0x4   :  { %420 = vmatprep.subr.bf16.mxu0 %v504_v0  ;;  %432 = vmatprep.subr.bf16.mxu1 %v504_v0  ;;  %v29_v10 = vpack.c.bf16 %v28_v8, %v27_v7  ;;  %v479_v12 = vld [vmem:[%s654_s3 + $0x18] sm:$0xff]   ;;  %v480_v13 = vld [vmem:[%s654_s3 + $0x20] sm:$0xff]   ;;  %v481_v14 = vld [vmem:[%s654_s3 + $0x28] sm:$0xff]  }
   0x5   :  { %v482_v15 = vld [vmem:[%s654_s3 + $0x30] sm:$0xff]   ;;  %v483_v16 = vld [vmem:[%s654_s3 + $0x38] sm:$0xff]   ;;  %v484_v17 = vld [vmem:[%s656_s5] sm:$0xff]  }
   0x6   :  { %v485_v18 = vld [vmem:[%s656_s5 + $0x8] sm:$0xff]   ;;  %v371_v19 = vld [vmem:[%s657_s2] ss:$0 sm:$0xff]  ;;  %v486_v35 = vld [vmem:[%s656_s5 + $0x10] sm:$0xff]  }
   0x7   :  { %421 = vmatpush3.bf16.msra.mxu0 %v473_v2  ;;  %433 = vmatpush3.bf16.msra.mxu1 %v477_v6  ;;  %v487_v36 = vld [vmem:[%s656_s5 + $0x18] sm:$0xff]   ;;  %v488_v37 = vld [vmem:[%s656_s5 + $0x20] sm:$0xff]   ;;  %v489_v38 = vld [vmem:[%s656_s5 + $0x28] sm:$0xff]  }
   0x8   :  { %422 = vmatprep.subr.bf16.mxu0 %v504_v0  ;;  %434 = vmatprep.subr.bf16.mxu1 %v504_v0  ;;  %v490_v39 = vld [vmem:[%s656_s5 + $0x30] sm:$0xff]   ;;  %v491_v40 = vld [vmem:[%s656_s5 + $0x38] sm:$0xff]   ;;  %v377_v41 = vld [vmem:[%s658_s4] ss:$0 sm:$0xff] }
   0x9   :  { %v386_v57 = vld [vmem:[%s659_s6] ss:$0 sm:$0xff] }
   0xb   :  { %423 = vmatpush3.bf16.msra.mxu0 %v474_v3  ;;  %435 = vmatpush3.bf16.msra.mxu1 %v478_v11 }
   0xc   :  { %424 = vmatprep.subr.bf16.mxu0 %v504_v0  ;;  %436 = vmatprep.subr.bf16.mxu1 %v504_v0 }
   0xf   :  { %425 = vmatpush3.bf16.msra.mxu0 %v71_v9  ;;  %437 = vmatpush3.bf16.msra.mxu1 %v479_v12 }
  0x10   :  { %450 = vmatprep.subr.bf16.mxu0 %v504_v0  ;;  %438 = vmatprep.subr.bf16.mxu1 %v504_v0 }
  0x12   :  { %427 = vmatmul.mubr.msk.bf16.vlgmr.msra.gmra.mrb[0].mxu0 %vm65_vm2, %v29_v10 }
  0x13   :  { %466 = vmatprep.mubr.msk.bf16.mxu0 %vm505_vm0, %v504_v0  ;;  %439 = vmatpush3.bf16.msra.mxu1 %v480_v13 }
  0x14   :  { %440 = vmatprep.subr.bf16.mxu1 %v504_v0  ;;  %451 = vmatpush3.bf16.msra.mxu0 %v484_v17 }
  0x15   :  { %452 = vmatprep.subr.bf16.mxu0 %v504_v0 }
  0x17   :  { %441 = vmatpush3.bf16.msra.mxu1 %v481_v14 }
  0x18   :  { %442 = vmatprep.subr.bf16.mxu1 %v504_v0  ;;  %453 = vmatpush3.bf16.msra.mxu0 %v485_v18 }
  0x19   :  { %454 = vmatprep.subr.bf16.mxu0 %v504_v0 }
  0x1b   :  { %443 = vmatpush3.bf16.msra.mxu1 %v482_v15 }
  0x1c   :  { %444 = vmatprep.subr.bf16.mxu1 %v504_v0  ;;  %455 = vmatpush3.bf16.msra.mxu0 %v486_v35 }
  0x1d   :  { %456 = vmatprep.subr.bf16.mxu0 %v504_v0 }
  0x1f   :  { %445 = vmatpush3.bf16.msra.mxu1 %v483_v16 }
  0x20   :  { %457 = vmatpush3.bf16.msra.mxu0 %v487_v36 }
  0x21   :  { %458 = vmatprep.subr.bf16.mxu0 %v504_v0 }
  0x24   :  { %459 = vmatpush3.bf16.msra.mxu0 %v488_v37 }
  0x25   :  { %460 = vmatprep.subr.bf16.mxu0 %v504_v0 }
  0x28   :  { %461 = vmatpush3.bf16.msra.mxu0 %v489_v38 }
  0x29   :  { %462 = vmatprep.subr.bf16.mxu0 %v504_v0 }
  0x2c   :  { %463 = vmatpush3.bf16.msra.mxu0 %v490_v39 }
  0x2d   :  { %464 = vmatprep.subr.bf16.mxu0 %v504_v0 }
  0x30   :  { %465 = vmatpush3.bf16.msra.mxu0 %v491_v40 }
  0xe5   :  { %v107_v20 = vpop.f32.mrb[0].mxu0 }
  0xe6   :  { %v108_v21 = vadd.f32 %v371_v19, %v107_v20  ;;  %v428_v22 = vpop.f32.mrb[1].mxu0 }
  0xe7   :  { %v110_v23 = vpop.f32.mrb[2].mxu0 }
  0xe8   :  { %v114_v24 = vmul.f32 0.5, %v108_v21  ;;  %v111_v25 = vadd.f32 %v371_v19, %v110_v23  ;;  %v429_v26 = vpop.f32.mrb[3].mxu0 }
  0xea   :  { %492 = vtanh.f32 %v114_v24  ;;  %v115_v27 = vmul.f32 0.5, %v111_v25 }
  0xec   :  { %494 = vtanh.f32 %v115_v27 }
  0xf4   :  { %v493_v28 = vpop.eup %492 }
  0xf5   :  { %v118_v29 = vmul.f32 0.5, %v493_v28 }
  0xf6   :  { %v495_v30 = vpop.eup %494 }
  0xf7   :  { %v119_v31 = vmul.f32 0.5, %v495_v30  ;;  %v120_v32 = vadd.f32 0.5, %v118_v29 }
  0xf9   :  { %v121_v33 = vadd.f32 0.5, %v119_v31 }
  0xfb   :  { %v122_v34 = vpack.c.bf16 %v121_v33, %v120_v32 }
  0xfd   :  { %447 = vmatmul.mubr.bf16.vlgmr.msra.gmra.mrb[0].mxu1 %v122_v34 }
 0x1d0   :  { %v228_v42 = vpop.f32.mrb[0].mxu1 }
 0x1d1   :  { %v229_v43 = vadd.f32 %v377_v41, %v228_v42  ;;  %v448_v44 = vpop.f32.mrb[1].mxu1 }
 0x1d2   :  { %v231_v45 = vpop.f32.mrb[2].mxu1 }
 0x1d3   :  { %v235_v46 = vmul.f32 0.5, %v229_v43  ;;  %v232_v47 = vadd.f32 %v377_v41, %v231_v45  ;;  %v449_v48 = vpop.f32.mrb[3].mxu1 }
 0x1d5   :  { %496 = vtanh.f32 %v235_v46  ;;  %v236_v49 = vmul.f32 0.5, %v232_v47 }
 0x1d7   :  { %498 = vtanh.f32 %v236_v49 }
 0x1df   :  { %v497_v50 = vpop.eup %496 }
 0x1e0   :  { %v239_v51 = vmul.f32 0.5, %v497_v50 }
 0x1e1   :  { %v499_v52 = vpop.eup %498 }
 0x1e2   :  { %v240_v53 = vmul.f32 0.5, %v499_v52  ;;  %v241_v54 = vadd.f32 0.5, %v239_v51 }
 0x1e4   :  { %v242_v55 = vadd.f32 0.5, %v240_v53 }
 0x1e6   :  { %v243_v56 = vpack.c.bf16 %v242_v55, %v241_v54 }
 0x1e8   :  { %467 = vmatmul.mubr.bf16.vlgmr.msra.gmra.mrb[4].mxu0 %v243_v56 }
 0x2bb   :  { %v349_v58 = vpop.f32.mrb[4].mxu0 }
 0x2bc   :  { %v350_v59 = vadd.f32 %v386_v57, %v349_v58  ;;  %v468_v60 = vpop.f32.mrb[5].mxu0 }
 0x2bd   :  { %v352_v61 = vpop.f32.mrb[6].mxu0 }
 0x2be   :  { %v356_v62 = vmul.f32 0.5, %v350_v59  ;;  %v353_v63 = vadd.f32 %v386_v57, %v352_v61  ;;  %v469_v0 = vpop.f32.mrb[7].mxu0 }
 0x2c0   :  { %500 = vtanh.f32 %v356_v62  ;;  %v357_v1 = vmul.f32 0.5, %v353_v63 }
 0x2c2   :  { %502 = vtanh.f32 %v357_v1 }
 0x2ca   :  { %v501_v2 = vpop.eup %500 }
 0x2cb   :  { %v360_v3 = vmul.f32 0.5, %v501_v2 }
 0x2cc   :  { %v503_v4 = vpop.eup %502 }
 0x2cd   :  { %v362_v5 = vadd.f32 0.5, %v360_v3  ;;  %v361_v6 = vmul.f32 0.5, %v503_v4 }
 0x2cf   :  { %365 = vst.msk [vmem:[%s660_s7] sm:$0xff] %vm364_vm3, %v362_v5  ;;  %v363_v7 = vadd.f32 0.5, %v361_v6 }
 0x2d1   :  { %366 = vst.msk [vmem:[%s660_s7 + $0x8] sm:$0xff] %vm364_vm3, %v363_v7 }

</bundles_post_ra>
